<compile_context>
chip_gen: v5e
topology: v5e:2x2
jax: 0.10.0
libtpu: 0.0.40
codegen_flags: <defaults>
</compile_context>

<pallas_src>
import functools

import jax
import jax.numpy as jnp
from jax import lax
from jax.experimental import pallas as pl
from jax.experimental.pallas import tpu as pltpu

# Deterministic "constructor args": SimplePowModule(2.0, 3, 0.5)
POWERS = (2.0, 3, 0.5)

_LANES = 128
_MAX_BLOCK_ROWS = 2048  # 2048 * 128 * 4B = 1 MiB per f32 buffer


def _apply_power(x, p):
    """Apply a single static power with the cheapest lowering available."""
    pf = float(p)
    if pf == round(pf):
        # Integer exponent: repeated multiplies on the 4-wide VALU, no EUP.
        return lax.integer_pow(x, int(round(pf)))
    if pf == 0.5:
        return jnp.sqrt(x)          # single EUP op
    if pf == -0.5:
        return lax.rsqrt(x)         # single EUP op
    # Generic fallback for arbitrary float exponents.
    return jnp.power(x, jnp.asarray(pf, dtype=x.dtype))


def _pow_kernel(x_ref, o_ref, *, powers):
    x = x_ref[...]
    if x.dtype != jnp.float32:
        # v5e VPU/EUP have no bf16 path; compute in f32 for non-f32 inputs.
        x = x.astype(jnp.float32)
    for p in powers:
        x = _apply_power(x, p)
    if x.dtype != o_ref.dtype:
        x = x.astype(o_ref.dtype)
    o_ref[...] = x


def simple_pow(x, powers=POWERS):
    """Apply sequential elementwise pow, matching SimplePowModule.forward."""
    orig_shape = x.shape
    orig_dtype = x.dtype
    n = x.size

    # Present a lane-dense 2D slab to the kernel.  For the test shape
    # (2,4,16,16) -> 2048 elements = 16 x 128, no padding required.
    if n % _LANES == 0 and (n // _LANES) % 8 == 0:
        rows = n // _LANES
        x2d = x.reshape(rows, _LANES)
        pad = 0
    else:
        # Generic fallback: pad to a full (8,128)-tileable slab.  Pad value
        # 1.0 stays finite for any power; the tail is sliced off afterwards.
        rows = ((pl.cdiv(n, _LANES) + 7) // 8) * 8
        pad = rows * _LANES - n
        x2d = jnp.pad(x.reshape(-1), (0, pad), constant_values=1.0).reshape(
            rows, _LANES
        )

    block_rows = min(rows, _MAX_BLOCK_ROWS)
    grid = (pl.cdiv(rows, block_rows),)

    kernel = functools.partial(_pow_kernel, powers=powers)
    out2d = pl.pallas_call(
        kernel,
        out_shape=jax.ShapeDtypeStruct((rows, _LANES), orig_dtype),
        grid_spec=pl.GridSpec(
            grid=grid,
            in_specs=[pl.BlockSpec((block_rows, _LANES), lambda i: (i, 0))],
            out_specs=pl.BlockSpec((block_rows, _LANES), lambda i: (i, 0)),
        ),
        compiler_params=pltpu.CompilerParams(
            dimension_semantics=("parallel",),
        ),
    )(x2d)

    if pad:
        return out2d.reshape(-1)[:n].reshape(orig_shape)
    return out2d.reshape(orig_shape)


if __name__ == "__main__":
    key = jax.random.PRNGKey(0)
    # Positive inputs so the fractional power (0.5) is well-defined, matching
    # the typical pow_test usage of positive tensors.
    x = jax.random.uniform(
        key, (2, 4, 16, 16), dtype=jnp.float32, minval=0.5, maxval=2.0
    )

    out = simple_pow(x, POWERS)
    out = jax.block_until_ready(out)

    # Reference check in plain JAX (sequential pow, same as the module).
    ref = x
    for p in POWERS:
        ref = jnp.power(ref, jnp.float32(p))
    assert out.shape == x.shape and out.dtype == x.dtype
    assert jnp.allclose(out, ref, rtol=1e-5, atol=1e-5)

    print("KERNEL_OK")
</pallas_src>

<mosaic_0001>
module attributes {stable_mosaic.version = 11 : i64} {
  func.func @_pow_kernel(%arg0: i32, %arg1: memref<16x128xf32, #tpu.memory_space<vmem>>, %arg2: memref<16x128xf32, #tpu.memory_space<vmem>>) attributes {dimension_semantics = [#tpu.dimension_semantics<parallel>], iteration_bounds = array<i64: 1>, scalar_prefetch = 0 : i64, scratch_operands = 0 : i64, tpu.core_type = #tpu.core_type<tc>, window_params = [{transform_indices = @transform_0, window_bounds = array<i64: 16, 128>}, {transform_indices = @transform_1, window_bounds = array<i64: 16, 128>}]} {
    %c0 = arith.constant 0 : index
    %c0_0 = arith.constant 0 : index
    %0 = vector.load %arg1[%c0, %c0_0] : memref<16x128xf32, #tpu.memory_space<vmem>>, vector<16x128xf32>
    %1 = arith.mulf %0, %0 : vector<16x128xf32>
    %2 = arith.mulf %1, %1 : vector<16x128xf32>
    %3 = arith.mulf %1, %2 : vector<16x128xf32>
    %4 = math.sqrt %3 : vector<16x128xf32>
    %c0_1 = arith.constant 0 : index
    %c0_2 = arith.constant 0 : index
    %5 = vector.load %arg2[%c0_1, %c0_2] : memref<16x128xf32, #tpu.memory_space<vmem>>, vector<16x128xf32>
    tpu.vector_store %arg2[%c0_1, %c0_2], %4 {strides = array<i32>} : memref<16x128xf32, #tpu.memory_space<vmem>>, vector<16x128xf32>,
    return
  }
  func.func @transform_0(%arg0: i32) -> (i32, i32) {
    %c0_i32 = arith.constant 0 : i32
    %c0_i32_0 = arith.constant 0 : i32
    return %arg0, %c0_i32 : i32, i32
  }
  func.func @transform_1(%arg0: i32) -> (i32, i32) {
    %c0_i32 = arith.constant 0 : i32
    %c0_i32_0 = arith.constant 0 : i32
    return %arg0, %c0_i32 : i32, i32
  }
}

</mosaic_0001>

<bundles_post_ra>
// kernel: tpu_custom_call.1
= control target key start
LH: loop header
LB: loop body
LE: loop exit
PB: predicated region body
PF: predicated region fallthrough
CT: control target
= control target key end

     0   :  { %6 = vsyncpa [#allocation3], 0  ;;  %s164_s0 = inlined_call_operand.hbm [shape: f32[16,128], index: 0, kind: input, shape index: {}]   ;;  %s165_s1 = inlined_call_operand.hbm [shape: f32[16,128], index: 1, kind: output, shape index: {}]  }
   0x1   :  { %7 = vsyncpa [#allocation4], 0  ;;  %s12_s8 = sshll.u32 %s164_s0, 4  ;;  %s138_s9 = smov [#allocation2]   ;;  %s13_s8 = int_to_ptr.hbm [resolvable:$true] %s12_s8 }
   0x2   :  { %s14_s10 = sshll.u32 %s138_s9, 4  ;;  %s139_s11 = smov 128   ;;  %s15_s10 = int_to_ptr.vmem [resolvable:$true] %s14_s10 }
   0x3   :  { %s140_s12 = smov 8  }
   0x4   :  { %20 = dma.hbm_to_vmem [thread:$0]  %s13_s8, 256, %s15_s10, [#allocation3], %s139_s11, %s139_s11, %s140_s12  }
   0x5   :  { %134 = dma.done.wait [#allocation3], 256  }
   0x6   :  { %135 = vsyncadd [#allocation3], 4294967040  ;;  %v25_v0 = vld [vmem:[#allocation2] sm:$0xff]  ;;  %v26_v1 = vld [vmem:[#allocation2 + $0x8] sm:$0xff]  ;;  %s141_s0 = smov [#allocation5]   ;;  %s65_s16 = sshll.u32 %s165_s1, 4  ;;  %s66_s16 = int_to_ptr.hbm [resolvable:$true] %s65_s16 }
   0x7   :  { %v27_v2 = vmul.f32 %v25_v0, %v25_v0  ;;  %v28_v3 = vmul.f32 %v26_v1, %v26_v1  ;;  %s63_s13 = sshll.u32 %s141_s0, 4  ;;  %s64_s13 = int_to_ptr.vmem [resolvable:$true] %s63_s13 }
   0x9   :  { %v29_v4 = vmul.f32 %v27_v2, %v27_v2  ;;  %v30_v5 = vmul.f32 %v28_v3, %v28_v3 }
   0xb   :  { %v31_v6 = vmul.f32 %v29_v4, %v27_v2  ;;  %v32_v7 = vmul.f32 %v30_v5, %v28_v3 }
   0xd   :  { %82 = vrsqrt.f32 %v31_v6  ;;  %vm40_vm0 = vcmp.eq.f32.partialorder %v31_v6, inf  ;;  %v43_v19 = vand.u32 2147483648, %v31_v6  ;;  %vm42_vm1 = vcmp.eq.f32.partialorder %v31_v6, 0.0 }
   0xe   :  { %84 = vrsqrt.f32 %v32_v7  ;;  %vm52_vm2 = vcmp.eq.f32.partialorder %v32_v7, inf  ;;  %v55_v22 = vand.u32 2147483648, %v32_v7  ;;  %vm54_vm3 = vcmp.eq.f32.partialorder %v32_v7, 0.0 }
  0x13   :  { %v83_v8 = vpop.eup %82 }
  0x14   :  { %v85_v9 = vpop.eup %84  ;;  %v34_v10 = vmul.f32 %v83_v8, %v31_v6 }
  0x15   :  { %v46_v11 = vmul.f32 %v85_v9, %v32_v7 }
  0x16   :  { %v35_v12 = vmul.f32 %v83_v8, %v34_v10 }
  0x17   :  { %v47_v13 = vmul.f32 %v85_v9, %v46_v11 }
  0x18   :  { %v36_v14 = vmul.f32 0.5, %v35_v12 }
  0x19   :  { %v48_v15 = vmul.f32 0.5, %v47_v13 }
  0x1a   :  { %v37_v16 = vsub.f32 1.5, %v36_v14 }
  0x1b   :  { %v49_v17 = vsub.f32 1.5, %v48_v15 }
  0x1c   :  { %v38_v18 = vmul.f32 %v83_v8, %v37_v16 }
  0x1d   :  { %v50_v20 = vmul.f32 %v85_v9, %v49_v17 }
  0x1e   :  { %v39_v21 = vmul.f32 %v38_v18, %v31_v6 }
  0x1f   :  { %v51_v23 = vmul.f32 %v50_v20, %v32_v7 }
  0x20   :  { %v41_v24 = vsel %vm40_vm0, %v31_v6, %v39_v21 }
  0x21   :  { %v44_v25 = vsel %vm42_vm1, %v43_v19, %v41_v24  ;;  %v53_v26 = vsel %vm52_vm2, %v32_v7, %v51_v23 }
  0x22   :  { %57 = vst [vmem:[#allocation5] sm:$0xff] %v44_v25  ;;  %v56_v27 = vsel %vm54_vm3, %v55_v22, %v53_v26 }
  0x23   :  { %58 = vst [vmem:[#allocation5 + $0x8] sm:$0xff] %v56_v27 }
  0x24   :  { %71 = dma.vmem_to_hbm [thread:$0]  %s64_s13, 256, %s66_s16, [#allocation4], %s139_s11, %s139_s11, %s140_s12  }
  0x25   :  { %136 = dma.done.wait [#allocation4], 256  }
  0x26   :  { %137 = vsyncadd [#allocation4], 4294967040 }
  0x27   :  { %76 = vsyncpa [#allocation3], 1 }
  0x28   :  { %77 = vsyncpa [#allocation4], 1 }

</bundles_post_ra>
